<compile_context>
chip_gen: v7x
topology: tpu7x:2x2x1
jax: 0.10.0
libtpu: 0.0.40
codegen_flags: <defaults>
</compile_context>

<pallas_src>
import functools

import jax
import jax.numpy as jnp
import numpy as np
from jax import lax
from jax.experimental import pallas as pl
from jax.experimental.pallas import tpu as pltpu

LANE = 128


def _round_up(v, m):
    return (v + m - 1) // m * m


# ---------------- BitLinear quantization (reference semantics) ----------------

def _act_quant(v):
    # per-token absmax int8 quantize-dequantize
    scale = 127.0 / jnp.clip(jnp.max(jnp.abs(v), axis=-1, keepdims=True), 1e-5, None)
    return jnp.clip(jnp.round(v * scale), -128.0, 127.0) / scale


def _weight_codes_and_inv(w):
    # ternary mean-abs quantization: integer codes in {-1,0,1} + dequant factor
    scale = 1.0 / jnp.clip(jnp.mean(jnp.abs(w)), 1e-5, None)
    codes = jnp.clip(jnp.round(w * scale), -1.0, 1.0)
    return codes, 1.0 / scale


def _weight_quant(w):
    codes, inv = _weight_codes_and_inv(w)
    return codes * inv


# ---------------- TPU generation detection (safe fallbacks) ----------------

def _tpu_generation():
    """Returns (is_v7x, has_int8_mxu, vmem_capacity_bytes)."""
    try:
        kind = jax.devices()[0].device_kind.lower()
    except Exception:
        kind = ""
    is_v7x = ("v7" in kind) or ("tpu7" in kind)
    # v5e / v6e MXUs have a native int8 path (~2x bf16, half the weight bytes);
    # v7x has no integer MXU (fp8 only) -> keep bf16 codes there.
    has_int8_mxu = any(t in kind for t in ("v5e", "v5 lite", "v5lite", "v6"))
    try:
        vmem_bytes = int(pltpu.get_tpu_info().vmem_capacity_bytes)
    except Exception:
        vmem_bytes = (64 if is_v7x else 128) * 1024 * 1024
    return is_v7x, has_int8_mxu, vmem_bytes


# ---------------- one-time weight packing (OUT of the hot path) ----------------

def pack_anemone_weights(w_gate, w_up, w_down, *, code_dtype=None):
    """Ternary-quantize and pack the three BitLinear weights once at init.

    w_gate / w_up: [F, D], w_down: [D, F]   (PyTorch nn.Linear layout).
    Returns a dict of device arrays reused by every anemone_mlp() call.
    """
    if code_dtype is None:
        _, has_int8, _ = _tpu_generation()
        code_dtype = jnp.int8 if has_int8 else jnp.bfloat16

    F, D = w_gate.shape
    D_pad = _round_up(D, LANE)
    F_pad = _round_up(F, LANE)

    g_codes, g_inv = _weight_codes_and_inv(w_gate)   # [F, D], scalar
    u_codes, u_inv = _weight_codes_and_inv(w_up)     # [F, D], scalar
    d_codes, d_inv = _weight_codes_and_inv(w_down)   # [D, F], scalar

    def _pack(codes_t, rows, cols):
        buf = jnp.zeros((rows, cols), code_dtype)
        return buf.at[:codes_t.shape[0], :codes_t.shape[1]].set(
            codes_t.astype(code_dtype))

    return {
        "wg": _pack(g_codes.T, D_pad, F_pad),     # [D_pad, F_pad] ternary codes
        "wu": _pack(u_codes.T, D_pad, F_pad),     # [D_pad, F_pad]
        "wd": _pack(d_codes.T, F_pad, D_pad),     # [F_pad, D_pad]
        # three scalar dequant factors, read from SMEM inside the kernel
        "scales": jnp.stack([g_inv, u_inv, d_inv]).astype(jnp.float32),
    }


# ---------------- tile / VMEM sizing ----------------

def _vmem_estimate(tt, ft, D_pad, F_pad, code_bytes, io_bytes):
    nf = F_pad // ft
    wbuf = 1 if nf == 1 else 2                              # Buffered(1) when resident
    weights = wbuf * 3 * D_pad * ft * code_bytes            # wg + wu + wd tiles
    xio = 2 * tt * D_pad * 2 * io_bytes                     # x + out tiles, 2 buffers
    scratch = (tt * D_pad * code_bytes                      # xq codes
               + tt * F_pad * 4                             # staged h (full F row)
               + tt * D_pad * 4                             # output accumulator
               + 8 * tt)                                    # x_inv, row max
    temps = 4 * tt * ft * 4                                 # gate/up/h f32 temporaries
    return weights + xio + scratch + temps + (2 << 20)


def _choose_tiles(T, D_pad, F_pad, code_bytes, io_bytes, is_v7x, vmem_cap,
                  token_tile, f_tile):
    granule = 32 if code_bytes == 1 else 8                  # int8 likes 32-row tiles
    budget = int(vmem_cap * 0.8)                            # ~100 MiB v5e/v6e, ~51 MiB v7x

    if token_tile is None:
        # v7x: smaller token tile when F is large (f32 temporaries + h staging
        # compete with streamed weights inside 64 MiB of VMEM).
        token_tile = 128 if (is_v7x and F_pad >= 4096) else 256
    tt = _round_up(min(token_tile, T), granule)
    if is_v7x and T > granule:
        # guarantee >= 2 token-grid steps so both v7x TensorCores get work
        tt = min(tt, _round_up(pl.cdiv(T, 2), granule))

    def largest_ft(target):
        q = F_pad // LANE
        best = 1
        for d in range(1, q + 1):
            if q % d == 0 and d * LANE <= target:
                best = d
        return best * LANE

    if f_tile is not None and f_tile % LANE == 0 and F_pad % f_tile == 0:
        ft = f_tile
    else:
        ft = largest_ft(min(F_pad, 1024))
        while ft > LANE and _vmem_estimate(tt, ft, D_pad, F_pad,
                                           code_bytes, io_bytes) > budget:
            ft = largest_ft(ft - LANE)
    while tt > granule and _vmem_estimate(tt, ft, D_pad, F_pad,
                                          code_bytes, io_bytes) > budget:
        tt = _round_up(max(granule, tt // 2), granule)

    return tt, ft, budget


# ---------------- Pallas kernel (hot path) ----------------

def _make_kernel(code_dtype, acc_dtype):
    dot = functools.partial(
        lax.dot_general,
        dimension_numbers=(((1,), (0,)), ((), ())),
        preferred_element_type=acc_dtype)

    def kernel(scales_ref, x_ref, wg_ref, wu_ref, wd_ref, o_ref,
               xq_sc, xinv_sc, h_sc, m_sc, acc_sc):
        p = pl.program_id(1)              # 0: gate/up + SwiGLU, 1: down projection
        j = pl.program_id(2)              # F-tile index
        nf = pl.num_programs(2)
        ft = wd_ref.shape[0]

        g_inv = scales_ref[0]
        u_inv = scales_ref[1]
        d_inv = scales_ref[2]

        # ---- once per token tile: int8 absmax quantization of x ----
        @pl.when((p == 0) & (j == 0))
        def _():
            x = x_ref[...].astype(jnp.float32)
            x_abs = jnp.clip(jnp.max(jnp.abs(x), axis=-1, keepdims=True), 1e-5, None)
            r = pl.reciprocal(x_abs, approx=True)            # EUP slot, not VALU
            xq = jnp.clip(jnp.round(x * (127.0 * r)), -128.0, 127.0)
            xq_sc[...] = xq.astype(code_dtype)
            xinv_sc[...] = x_abs * (1.0 / 127.0)             # per-row dequant factor
            m_sc[...] = jnp.zeros_like(m_sc)

        # ---- phase 0: gate/up projection of F tile j, SwiGLU, stage h ----
        @pl.when(p == 0)
        def _():
            xq = xq_sc[...]
            gate = dot(xq, wg_ref[...]).astype(jnp.float32)
            up = dot(xq, wu_ref[...]).astype(jnp.float32)
            x_inv = xinv_sc[...]
            # scalar weight dequant factors folded into the per-row factor
            h = jax.nn.silu(gate * (x_inv * g_inv)) * (up * (x_inv * u_inv))
            off = pl.multiple_of(j * ft, ft)
            h_sc[:, pl.ds(off, ft)] = h
            m_sc[...] = jnp.maximum(
                m_sc[...], jnp.max(jnp.abs(h), axis=-1, keepdims=True))

        # ---- phase 1: re-quantize h against the FULL-row max, down-project ----
        @pl.when(p == 1)
        def _():
            @pl.when(j == 0)
            def _():
                acc_sc[...] = jnp.zeros_like(acc_sc)

            off = pl.multiple_of(j * ft, ft)
            h = h_sc[:, pl.ds(off, ft)]
            h_abs = jnp.clip(m_sc[...], 1e-5, None)
            r = pl.reciprocal(h_abs, approx=True)
            hq = jnp.clip(jnp.round(h * (127.0 * r)), -128.0, 127.0).astype(code_dtype)
            acc_sc[...] += dot(hq, wd_ref[...]).astype(jnp.float32)

            @pl.when(j == nf - 1)
            def _():
                h_inv = h_abs * (d_inv * (1.0 / 127.0))
                o_ref[...] = (acc_sc[...] * h_inv).astype(o_ref.dtype)

    return kernel


# ---------------- forward wrapper ----------------

@functools.partial(jax.jit, static_argnames=("token_tile", "f_tile"))
def anemone_mlp(x, packed, *, token_tile=None, f_tile=None):
    """x: [B, S, D]; packed: output of pack_anemone_weights (call once at init)."""
    B, S, D = x.shape
    T = B * S

    wg, wu, wd, scales = packed["wg"], packed["wu"], packed["wd"], packed["scales"]
    D_pad, F_pad = wg.shape
    code_dtype = wg.dtype
    code_bytes = jnp.dtype(code_dtype).itemsize
    acc_dtype = jnp.int32 if code_dtype == jnp.int8 else jnp.float32

    is_v7x, _, vmem_cap = _tpu_generation()
    io_bytes = jnp.dtype(x.dtype).itemsize
    tt, ft, vmem_limit = _choose_tiles(T, D_pad, F_pad, code_bytes, io_bytes,
                                       is_v7x, vmem_cap, token_tile, f_tile)
    T_pad = _round_up(T, tt)
    nt, nf = T_pad // tt, F_pad // ft

    xf = x.reshape(T, D)
    if T_pad != T or D_pad != D:
        xf = jnp.zeros((T_pad, D_pad), x.dtype).at[:T, :D].set(xf)

    # constant-index (fully resident) weight tiles need no double buffering
    w_bufs = pl.Buffered(1) if nf == 1 else pl.Buffered(2)

    kernel = _make_kernel(code_dtype, acc_dtype)

    out = pl.pallas_call(
        kernel,
        out_shape=jax.ShapeDtypeStruct((T_pad, D_pad), x.dtype),
        grid_spec=pltpu.PrefetchScalarGridSpec(
            num_scalar_prefetch=0,
            # token tiles  x  {gate/up, down} phase  x  F tiles
            grid=(nt, 2, nf),
            in_specs=[
                pl.BlockSpec(memory_space=pltpu.MemorySpace.SMEM),   # 3 dequant scalars
                pl.BlockSpec((tt, D_pad), lambda i, p, j: (i, 0)),   # x token tile
                pl.BlockSpec((D_pad, ft),
                             lambda i, p, j: (0, j * (1 - p) + (nf - 1) * p),
                             pipeline_mode=w_bufs),                  # gate weight tile
                pl.BlockSpec((D_pad, ft),
                             lambda i, p, j: (0, j * (1 - p) + (nf - 1) * p),
                             pipeline_mode=w_bufs),                  # up weight tile
                pl.BlockSpec((ft, D_pad),
                             lambda i, p, j: (j * p, 0),
                             pipeline_mode=w_bufs),                  # down weight tile
            ],
            out_specs=pl.BlockSpec((tt, D_pad), lambda i, p, j: (i, 0)),
            scratch_shapes=[
                pltpu.VMEM((tt, D_pad), code_dtype),    # xq codes (reused over F tiles)
                pltpu.VMEM((tt, 1), jnp.float32),       # per-row x dequant factor
                pltpu.VMEM((tt, F_pad), jnp.float32),   # staged h (full F row)
                pltpu.VMEM((tt, 1), jnp.float32),       # running row max of |h|
                pltpu.VMEM((tt, D_pad), jnp.float32),   # output accumulator
            ],
        ),
        compiler_params=pltpu.CompilerParams(
            dimension_semantics=("parallel", "arbitrary", "arbitrary"),
            vmem_limit_bytes=vmem_limit,
        ),
    )(scales, xf, wg, wu, wd)

    return out[:T, :D].reshape(B, S, D)


# ---------------- pure-JAX reference ----------------

def ref_mlp(x, w_gate, w_up, w_down):
    B, S, D = x.shape
    hp = jax.lax.Precision.HIGHEST
    xf = x.reshape(-1, D)
    xq = _act_quant(xf)
    gate = jnp.dot(xq, _weight_quant(w_gate).T, precision=hp)
    up = jnp.dot(xq, _weight_quant(w_up).T, precision=hp)
    h = jax.nn.silu(gate) * up
    hq = _act_quant(h)
    out = jnp.dot(hq, _weight_quant(w_down).T, precision=hp)
    return out.reshape(B, S, D)


if __name__ == "__main__":
    # Small shapes implied by the module: head_dim -> ffn_dim -> head_dim
    batch, seq, head_dim, ffn_dim = 2, 8, 32, 256

    key = jax.random.PRNGKey(0)
    kx, kg, ku, kd = jax.random.split(key, 4)
    x = jax.random.normal(kx, (batch, seq, head_dim), dtype=jnp.float32)
    # nn.Linear weight layout: [out_features, in_features], bias=False
    w_gate = 0.05 * jax.random.normal(kg, (ffn_dim, head_dim), dtype=jnp.float32)
    w_up = 0.05 * jax.random.normal(ku, (ffn_dim, head_dim), dtype=jnp.float32)
    w_down = 0.05 * jax.random.normal(kd, (head_dim, ffn_dim), dtype=jnp.float32)

    # Weight quantization / packing happens exactly once (init time), then the
    # packed codes + scalar scales are reused by every forward call.
    packed = jax.block_until_ready(pack_anemone_weights(w_gate, w_up, w_down))

    out = jax.block_until_ready(anemone_mlp(x, packed))
    ref = jax.block_until_ready(ref_mlp(x, w_gate, w_up, w_down))
    np.testing.assert_allclose(np.asarray(out), np.asarray(ref), rtol=2e-2, atol=2e-2)

    # Second case: padded token tail, multi-step token grid (T=272 -> 2 tiles)
    # and a forced 128-wide F tile so the two-phase F-streaming path (nf > 1,
    # staged h + output accumulation) is exercised with the SAME packed weights.
    x2 = jax.random.normal(jax.random.PRNGKey(1), (2, 136, head_dim), dtype=jnp.float32)
    out2 = jax.block_until_ready(anemone_mlp(x2, packed, f_tile=128))
    ref2 = jax.block_until_ready(ref_mlp(x2, w_gate, w_up, w_down))
    np.testing.assert_allclose(np.asarray(out2), np.asarray(ref2), rtol=2e-2, atol=2e-2)

    print("KERNEL_OK")
</pallas_src>

<mosaic_0001>
module attributes {stable_mosaic.version = 11 : i64} {
  func.func @kernel(%arg0: i32, %arg1: i32, %arg2: i32, %arg3: memref<3xf32, #tpu.memory_space<smem>>, %arg4: memref<16x128xf32, #tpu.memory_space<vmem>>, %arg5: memref<128x256xbf16, #tpu.memory_space<vmem>>, %arg6: memref<128x256xbf16, #tpu.memory_space<vmem>>, %arg7: memref<256x128xbf16, #tpu.memory_space<vmem>>, %arg8: memref<16x128xf32, #tpu.memory_space<vmem>>, %arg9: memref<16x128xbf16, #tpu.memory_space<vmem>>, %arg10: memref<16x1xf32, #tpu.memory_space<vmem>>, %arg11: memref<16x256xf32, #tpu.memory_space<vmem>>, %arg12: memref<16x1xf32, #tpu.memory_space<vmem>>, %arg13: memref<16x128xf32, #tpu.memory_space<vmem>>) attributes {dimension_semantics = [#tpu.dimension_semantics<parallel>, #tpu.dimension_semantics<arbitrary>, #tpu.dimension_semantics<arbitrary>], iteration_bounds = array<i64: 1, 2, 1>, scalar_prefetch = 0 : i64, scratch_operands = 5 : i64, tpu.core_type = #tpu.core_type<tc>, window_params = [{transform_indices = @transform_0, window_bounds = array<i64: 3>}, {transform_indices = @transform_1, window_bounds = array<i64: 16, 128>}, {pipeline_mode = #tpu.pipeline_mode<synchronous>, transform_indices = @transform_2, window_bounds = array<i64: 128, 256>}, {pipeline_mode = #tpu.pipeline_mode<synchronous>, transform_indices = @transform_3, window_bounds = array<i64: 128, 256>}, {pipeline_mode = #tpu.pipeline_mode<synchronous>, transform_indices = @transform_4, window_bounds = array<i64: 256, 128>}, {transform_indices = @transform_5, window_bounds = array<i64: 16, 128>}]} {
    %c0 = arith.constant 0 : index
    %0 = memref.load %arg3[%c0] : memref<3xf32, #tpu.memory_space<smem>>
    %c1 = arith.constant 1 : index
    %1 = memref.load %arg3[%c1] : memref<3xf32, #tpu.memory_space<smem>>
    %c2 = arith.constant 2 : index
    %2 = memref.load %arg3[%c2] : memref<3xf32, #tpu.memory_space<smem>>
    %c0_i32 = arith.constant 0 : i32
    %3 = arith.cmpi eq, %arg1, %c0_i32 : i32
    %c0_i32_0 = arith.constant 0 : i32
    %4 = arith.cmpi eq, %arg2, %c0_i32_0 : i32
    %5 = arith.andi %3, %4 : i1
    %6 = arith.extui %5 : i1 to i32
    %c0_i32_1 = arith.constant 0 : i32
    %7 = arith.cmpi ne, %6, %c0_i32_1 : i32
    scf.if %7 {
      %c0_5 = arith.constant 0 : index
      %c0_6 = arith.constant 0 : index
      %14 = vector.load %arg4[%c0_5, %c0_6] : memref<16x128xf32, #tpu.memory_space<vmem>>, vector<16x128xf32>
      %15 = math.absf %14 : vector<16x128xf32>
      %cst = arith.constant dense<0xFF800000> : vector<16xf32>
      %16 = vector.multi_reduction <maximumf>, %15, %cst [1] : vector<16x128xf32> to vector<16xf32>
      %17 = vector.shape_cast %16 : vector<16xf32> to vector<16x1xf32>
      %cst_7 = arith.constant 9.99999974E-6 : f32
      %18 = vector.broadcast %cst_7 : f32 to vector<16x1xf32>
      %19 = arith.maximumf %18, %17 : vector<16x1xf32>
      %20 = tpu.reciprocal %19 {approx = true} : vector<16x1xf32> -> vector<16x1xf32>
      %cst_8 = arith.constant 1.270000e+02 : f32
      %21 = vector.broadcast %cst_8 : f32 to vector<16x1xf32>
      %22 = arith.mulf %21, %20 : vector<16x1xf32>
      %23 = vector.broadcast %22 : vector<16x1xf32> to vector<16x128xf32>
      %24 = arith.mulf %14, %23 : vector<16x128xf32>
      %25 = math.roundeven %24 : vector<16x128xf32>
      %cst_9 = arith.constant -1.280000e+02 : f32
      %cst_10 = arith.constant 1.270000e+02 : f32
      %26 = vector.broadcast %cst_9 : f32 to vector<16x128xf32>
      %27 = arith.maximumf %26, %25 : vector<16x128xf32>
      %28 = vector.broadcast %cst_10 : f32 to vector<16x128xf32>
      %29 = arith.minimumf %28, %27 : vector<16x128xf32>
      %30 = arith.truncf %29 : vector<16x128xf32> to vector<16x128xbf16>
      %c0_11 = arith.constant 0 : index
      %c0_12 = arith.constant 0 : index
      %31 = vector.load %arg9[%c0_11, %c0_12] : memref<16x128xbf16, #tpu.memory_space<vmem>>, vector<16x128xbf16>
      tpu.vector_store %arg9[%c0_11, %c0_12], %30 {strides = array<i32>} : memref<16x128xbf16, #tpu.memory_space<vmem>>, vector<16x128xbf16>,
      %cst_13 = arith.constant 0.00787401571 : f32
      %32 = vector.broadcast %cst_13 : f32 to vector<16x1xf32>
      %33 = arith.mulf %19, %32 : vector<16x1xf32>
      %c0_14 = arith.constant 0 : index
      %c0_15 = arith.constant 0 : index
      %34 = vector.load %arg10[%c0_14, %c0_15] : memref<16x1xf32, #tpu.memory_space<vmem>>, vector<16x1xf32>
      tpu.vector_store %arg10[%c0_14, %c0_15], %33 {strides = array<i32>} : memref<16x1xf32, #tpu.memory_space<vmem>>, vector<16x1xf32>,
      %cst_16 = arith.constant 0.000000e+00 : f32
      %35 = vector.broadcast %cst_16 : f32 to vector<16x1xf32>
      %c0_17 = arith.constant 0 : index
      %c0_18 = arith.constant 0 : index
      %36 = vector.load %arg12[%c0_17, %c0_18] : memref<16x1xf32, #tpu.memory_space<vmem>>, vector<16x1xf32>
      tpu.vector_store %arg12[%c0_17, %c0_18], %35 {strides = array<i32>} : memref<16x1xf32, #tpu.memory_space<vmem>>, vector<16x1xf32>,
    } else {
    }
    %c0_i32_2 = arith.constant 0 : i32
    %8 = arith.cmpi eq, %arg1, %c0_i32_2 : i32
    %9 = arith.extui %8 : i1 to i32
    %c0_i32_3 = arith.constant 0 : i32
    %10 = arith.cmpi ne, %9, %c0_i32_3 : i32
    scf.if %10 {
      %c0_5 = arith.constant 0 : index
      %c0_6 = arith.constant 0 : index
      %14 = vector.load %arg9[%c0_5, %c0_6] : memref<16x128xbf16, #tpu.memory_space<vmem>>, vector<16x128xbf16>
      %c0_7 = arith.constant 0 : index
      %c0_8 = arith.constant 0 : index
      %15 = vector.load %arg5[%c0_7, %c0_8] : memref<128x256xbf16, #tpu.memory_space<vmem>>, vector<128x256xbf16>
      %cst = arith.constant dense<0.000000e+00> : vector<16x256xf32>
      %16 = tpu.matmul %14, %15, %cst {dimension_numbers = #tpu.dot_dimension_numbers<[1], [0], [0], [1], [0, 0, 1, 1], [], []>} : vector<16x128xbf16>, vector<128x256xbf16>, vector<16x256xf32> -> vector<16x256xf32>
      %c0_9 = arith.constant 0 : index
      %c0_10 = arith.constant 0 : index
      %17 = vector.load %arg6[%c0_9, %c0_10] : memref<128x256xbf16, #tpu.memory_space<vmem>>, vector<128x256xbf16>
      %cst_11 = arith.constant dense<0.000000e+00> : vector<16x256xf32>
      %18 = tpu.matmul %14, %17, %cst_11 {dimension_numbers = #tpu.dot_dimension_numbers<[1], [0], [0], [1], [0, 0, 1, 1], [], []>} : vector<16x128xbf16>, vector<128x256xbf16>, vector<16x256xf32> -> vector<16x256xf32>
      %c0_12 = arith.constant 0 : index
      %c0_13 = arith.constant 0 : index
      %19 = vector.load %arg10[%c0_12, %c0_13] : memref<16x1xf32, #tpu.memory_space<vmem>>, vector<16x1xf32>
      %20 = vector.broadcast %0 : f32 to vector<16x1xf32>
      %21 = arith.mulf %19, %20 : vector<16x1xf32>
      %22 = vector.broadcast %21 : vector<16x1xf32> to vector<16x256xf32>
      %23 = arith.mulf %16, %22 : vector<16x256xf32>
      %24 = arith.negf %23 : vector<16x256xf32>
      %25 = math.exp %24 : vector<16x256xf32>
      %cst_14 = arith.constant 1.000000e+00 : f32
      %26 = vector.broadcast %cst_14 : f32 to vector<16x256xf32>
      %27 = arith.addf %26, %25 : vector<16x256xf32>
      %28 = arith.divf %26, %27 : vector<16x256xf32>
      %29 = arith.mulf %23, %28 : vector<16x256xf32>
      %30 = vector.broadcast %1 : f32 to vector<16x1xf32>
      %31 = arith.mulf %19, %30 : vector<16x1xf32>
      %32 = vector.broadcast %31 : vector<16x1xf32> to vector<16x256xf32>
      %33 = arith.mulf %18, %32 : vector<16x256xf32>
      %34 = arith.mulf %29, %33 : vector<16x256xf32>
      %c256_i32 = arith.constant 256 : i32
      %35 = arith.muli %arg2, %c256_i32 : i32
      %36 = tpu.assume_multiple %35, 256 : i32
      %c0_15 = arith.constant 0 : index
      %37 = arith.index_cast %36 : i32 to index
      %38 = vector.load %arg11[%c0_15, %37] : memref<16x256xf32, #tpu.memory_space<vmem>>, vector<16x256xf32>
      tpu.vector_store %arg11[%c0_15, %37], %34 {strides = array<i32>} : memref<16x256xf32, #tpu.memory_space<vmem>>, vector<16x256xf32>,
      %c0_16 = arith.constant 0 : index
      %c0_17 = arith.constant 0 : index
      %39 = vector.load %arg12[%c0_16, %c0_17] : memref<16x1xf32, #tpu.memory_space<vmem>>, vector<16x1xf32>
      %40 = math.absf %34 : vector<16x256xf32>
      %cst_18 = arith.constant dense<0xFF800000> : vector<16xf32>
      %41 = vector.multi_reduction <maximumf>, %40, %cst_18 [1] : vector<16x256xf32> to vector<16xf32>
      %42 = vector.shape_cast %41 : vector<16xf32> to vector<16x1xf32>
      %43 = arith.maximumf %39, %42 : vector<16x1xf32>
      %c0_19 = arith.constant 0 : index
      %c0_20 = arith.constant 0 : index
      %44 = vector.load %arg12[%c0_19, %c0_20] : memref<16x1xf32, #tpu.memory_space<vmem>>, vector<16x1xf32>
      tpu.vector_store %arg12[%c0_19, %c0_20], %43 {strides = array<i32>} : memref<16x1xf32, #tpu.memory_space<vmem>>, vector<16x1xf32>,
    } else {
    }
    %c1_i32 = arith.constant 1 : i32
    %11 = arith.cmpi eq, %arg1, %c1_i32 : i32
    %12 = arith.extui %11 : i1 to i32
    %c0_i32_4 = arith.constant 0 : i32
    %13 = arith.cmpi ne, %12, %c0_i32_4 : i32
    scf.if %13 {
      %c0_i32_5 = arith.constant 0 : i32
      %14 = arith.cmpi eq, %arg2, %c0_i32_5 : i32
      %15 = arith.extui %14 : i1 to i32
      %c0_i32_6 = arith.constant 0 : i32
      %16 = arith.cmpi ne, %15, %c0_i32_6 : i32
      scf.if %16 {
        %cst_22 = arith.constant 0.000000e+00 : f32
        %43 = vector.broadcast %cst_22 : f32 to vector<16x128xf32>
        %c0_23 = arith.constant 0 : index
        %c0_24 = arith.constant 0 : index
        %44 = vector.load %arg13[%c0_23, %c0_24] : memref<16x128xf32, #tpu.memory_space<vmem>>, vector<16x128xf32>
        tpu.vector_store %arg13[%c0_23, %c0_24], %43 {strides = array<i32>} : memref<16x128xf32, #tpu.memory_space<vmem>>, vector<16x128xf32>,
      } else {
      }
      %c256_i32 = arith.constant 256 : i32
      %17 = arith.muli %arg2, %c256_i32 : i32
      %18 = tpu.assume_multiple %17, 256 : i32
      %c0_7 = arith.constant 0 : index
      %19 = arith.index_cast %18 : i32 to index
      %20 = vector.load %arg11[%c0_7, %19] : memref<16x256xf32, #tpu.memory_space<vmem>>, vector<16x256xf32>
      %c0_8 = arith.constant 0 : index
      %c0_9 = arith.constant 0 : index
      %21 = vector.load %arg12[%c0_8, %c0_9] : memref<16x1xf32, #tpu.memory_space<vmem>>, vector<16x1xf32>
      %cst = arith.constant 9.99999974E-6 : f32
      %22 = vector.broadcast %cst : f32 to vector<16x1xf32>
      %23 = arith.maximumf %22, %21 : vector<16x1xf32>
      %24 = tpu.reciprocal %23 {approx = true} : vector<16x1xf32> -> vector<16x1xf32>
      %cst_10 = arith.constant 1.270000e+02 : f32
      %25 = vector.broadcast %cst_10 : f32 to vector<16x1xf32>
      %26 = arith.mulf %25, %24 : vector<16x1xf32>
      %27 = vector.broadcast %26 : vector<16x1xf32> to vector<16x256xf32>
      %28 = arith.mulf %20, %27 : vector<16x256xf32>
      %29 = math.roundeven %28 : vector<16x256xf32>
      %cst_11 = arith.constant -1.280000e+02 : f32
      %cst_12 = arith.constant 1.270000e+02 : f32
      %30 = vector.broadcast %cst_11 : f32 to vector<16x256xf32>
      %31 = arith.maximumf %30, %29 : vector<16x256xf32>
      %32 = vector.broadcast %cst_12 : f32 to vector<16x256xf32>
      %33 = arith.minimumf %32, %31 : vector<16x256xf32>
      %34 = arith.truncf %33 : vector<16x256xf32> to vector<16x256xbf16>
      %c0_13 = arith.constant 0 : index
      %c0_14 = arith.constant 0 : index
      %35 = vector.load %arg13[%c0_13, %c0_14] : memref<16x128xf32, #tpu.memory_space<vmem>>, vector<16x128xf32>
      %c0_15 = arith.constant 0 : index
      %c0_16 = arith.constant 0 : index
      %36 = vector.load %arg7[%c0_15, %c0_16] : memref<256x128xbf16, #tpu.memory_space<vmem>>, vector<256x128xbf16>
      %cst_17 = arith.constant dense<0.000000e+00> : vector<16x128xf32>
      %37 = tpu.matmul %34, %36, %cst_17 {dimension_numbers = #tpu.dot_dimension_numbers<[1], [0], [0], [1], [0, 0, 1, 1], [], []>} : vector<16x256xbf16>, vector<256x128xbf16>, vector<16x128xf32> -> vector<16x128xf32>
      %38 = arith.addf %35, %37 : vector<16x128xf32>
      %c0_18 = arith.constant 0 : index
      %c0_19 = arith.constant 0 : index
      %39 = vector.load %arg13[%c0_18, %c0_19] : memref<16x128xf32, #tpu.memory_space<vmem>>, vector<16x128xf32>
      tpu.vector_store %arg13[%c0_18, %c0_19], %38 {strides = array<i32>} : memref<16x128xf32, #tpu.memory_space<vmem>>, vector<16x128xf32>,
      %c0_i32_20 = arith.constant 0 : i32
      %40 = arith.cmpi eq, %arg2, %c0_i32_20 : i32
      %41 = arith.extui %40 : i1 to i32
      %c0_i32_21 = arith.constant 0 : i32
      %42 = arith.cmpi ne, %41, %c0_i32_21 : i32
      scf.if %42 {
        %cst_22 = arith.constant 0.00787401571 : f32
        %43 = arith.mulf %2, %cst_22 : f32
        %44 = vector.broadcast %43 : f32 to vector<16x1xf32>
        %45 = arith.mulf %23, %44 : vector<16x1xf32>
        %c0_23 = arith.constant 0 : index
        %c0_24 = arith.constant 0 : index
        %46 = vector.load %arg13[%c0_23, %c0_24] : memref<16x128xf32, #tpu.memory_space<vmem>>, vector<16x128xf32>
        %47 = vector.broadcast %45 : vector<16x1xf32> to vector<16x128xf32>
        %48 = arith.mulf %46, %47 : vector<16x128xf32>
        %c0_25 = arith.constant 0 : index
        %c0_26 = arith.constant 0 : index
        %49 = vector.load %arg8[%c0_25, %c0_26] : memref<16x128xf32, #tpu.memory_space<vmem>>, vector<16x128xf32>
        tpu.vector_store %arg8[%c0_25, %c0_26], %48 {strides = array<i32>} : memref<16x128xf32, #tpu.memory_space<vmem>>, vector<16x128xf32>,
      } else {
      }
    } else {
    }
    return
  }
  func.func @transform_0(%arg0: i32, %arg1: i32, %arg2: i32) -> i32 {
    %c0_i32 = arith.constant 0 : i32
    %c0_i32_0 = arith.constant 0 : i32
    return %c0_i32 : i32
  }
  func.func @transform_1(%arg0: i32, %arg1: i32, %arg2: i32) -> (i32, i32) {
    %c0_i32 = arith.constant 0 : i32
    %c0_i32_0 = arith.constant 0 : i32
    return %arg0, %c0_i32 : i32, i32
  }
  func.func @transform_2(%arg0: i32, %arg1: i32, %arg2: i32) -> (i32, i32) {
    %c1_i32 = arith.constant 1 : i32
    %0 = arith.subi %c1_i32, %arg1 : i32
    %1 = arith.muli %arg2, %0 : i32
    %c0_i32 = arith.constant 0 : i32
    %2 = arith.muli %c0_i32, %arg1 : i32
    %3 = arith.addi %1, %2 : i32
    %c0_i32_0 = arith.constant 0 : i32
    %c0_i32_1 = arith.constant 0 : i32
    return %c0_i32_0, %3 : i32, i32
  }
  func.func @transform_3(%arg0: i32, %arg1: i32, %arg2: i32) -> (i32, i32) {
    %c1_i32 = arith.constant 1 : i32
    %0 = arith.subi %c1_i32, %arg1 : i32
    %1 = arith.muli %arg2, %0 : i32
    %c0_i32 = arith.constant 0 : i32
    %2 = arith.muli %c0_i32, %arg1 : i32
    %3 = arith.addi %1, %2 : i32
    %c0_i32_0 = arith.constant 0 : i32
    %c0_i32_1 = arith.constant 0 : i32
    return %c0_i32_0, %3 : i32, i32
  }
  func.func @transform_4(%arg0: i32, %arg1: i32, %arg2: i32) -> (i32, i32) {
    %0 = arith.muli %arg2, %arg1 : i32
    %c0_i32 = arith.constant 0 : i32
    %c0_i32_0 = arith.constant 0 : i32
    return %0, %c0_i32 : i32, i32
  }
  func.func @transform_5(%arg0: i32, %arg1: i32, %arg2: i32) -> (i32, i32) {
    %c0_i32 = arith.constant 0 : i32
    %c0_i32_0 = arith.constant 0 : i32
    return %arg0, %c0_i32 : i32, i32
  }
}

</mosaic_0001>

<bundles_post_ra>
// kernel: anemone_mlp.1
= control target key start
LH: loop header
LB: loop body
LE: loop exit
PB: predicated region body
PF: predicated region fallthrough
CT: control target
= control target key end

     0   :  { %10 = vsyncpa [#allocation10], 0  ;;  %s1875_s0 = inlined_call_operand.hbm [shape: f32[3], index: 0, kind: input, shape index: {}]   ;;  %s1876_s1 = inlined_call_operand.hbm [shape: f32[16,128], index: 1, kind: input, shape index: {}]   ;;  %s1877_s2 = inlined_call_operand.hbm [shape: bf16[128,256], index: 2, kind: input, shape index: {}]   ;;  %s1878_s3 = inlined_call_operand.hbm [shape: bf16[128,256], index: 3, kind: input, shape index: {}]   ;;  %s1879_s4 = inlined_call_operand.hbm [shape: bf16[256,128], index: 4, kind: input, shape index: {}]   ;;  %s1880_s5 = inlined_call_operand.hbm [shape: f32[16,128], index: 5, kind: output, shape index: {}]  }
   0x1   :  { %11 = vsyncpa [#allocation8], 0 }
   0x2   :  { %12 = vsyncpa [#allocation13], 0 }
   0x3   :  { %13 = vsyncpa [#allocation16], 0 }
   0x4   :  { %14 = vsyncpa [#allocation9], 0  ;;  %s1656_s18 = smov 0   ;;  %s1658_s19 = smov 0  }
   0x5   :  { %s1660_s20 = smov 0  }
   0x6 LB: > { %s1130_s21 = sadd.s32 4294967295, %s1609_s20   ;;  %p1131_p0 = scmp.ge.s32.totalorder %s1609_s20, 1  ;;  %s1609_s20 = sphi %s1660_s20, %s20_s20   ;;  %s1605_s19 = sphi %s1658_s19, %s1894_s19   ;;  %s1601_s18 = sphi %s1656_s18, %s1893_s18  }
   0x7   : > { %p205_p1 = scmp.lt.s32.totalorder %s1609_s20, 3  ;;  %p1676_p2 = scmp.eq.s32.totalorder %s1130_s21, 0 }
   0x8   : > { %s1611_s24 = smov [#allocation12]   ;;  %s35_s27 = sadd.s32 1, %s1605_s19 }
   0x9   : > { %s1884_s22 = scalar_select %p1676_p2, 1, 0 }
   0xa   : > { %p1680_p3 = pnand %p1131_p0, %p205_p1  ;;  %s247_s25 = sshll.u32 %s1611_s24, 4  ;;  %s248_s25 = int_to_ptr.vmem [resolvable:$true] %s247_s25 }
   0xb   : > { %p1693_p6 = scmp.ge.s32.totalorder %s35_s27, 2  ;;  %s1416_s6 = scalar_lea.hbm %s1877_s2, 2048 }
   0xc   : > { %s1885_s23 = scalar_select %p1680_p3, 1, 0 }
   0xd   : > { %p1257_p4 = pneg %p1680_p3  ;;  %p1417_p7 = scmp.ne.s32.totalorder %s1877_s2, %s1416_s6 }
   0xe   : > { %s1887_s28 = scalar_select %p1693_p6, 1, 0 }
   0xf   : > { %p1688_p5 = pnand %p1676_p2, %p1257_p4  ;;  %p1423_p11 = scmp.lt.u32.totalorder %s1416_s6, %s1877_s2 }
  0x11   : > { %p1705_p8 = pneg %p1688_p5 }
  0x13   : > { %p1419_p9 = pnand %p1705_p8, %p1417_p7 }
  0x15   : > { %p1420_p10 = pneg %p1419_p9 }
  0x17   : > { %p1425_p12 = pnand %p1423_p11, %p1420_p10 }
  0x19   : > { %1428 = shalt.err (!%p1425_p12)
}
  0x1a   : > { %s1429_s12 = scalar_lea.vmem %s248_s25, 2048  ;;  %p1437_p4 = scmp.lt.s32.totalorder %s248_s25, %s248_s25 }
  0x1b   : > { %p1430_p13 = scmp.ne.s32.totalorder %s248_s25, %s1429_s12  ;;  %p1438_p2 = scmp.lt.s32.totalorder %s1429_s12, %s1429_s12 }
  0x1d   : > { %p1432_p0 = pnand %p1430_p13, %p1705_p8  ;;  %p1439_p3 = por %p1438_p2, %p1437_p4 }
  0x1f   : > { %p1433_p1 = pneg %p1432_p0 }
  0x21   : > { %p1440_p6 = pnand %p1439_p3, %p1433_p1 }
  0x23   : > { %1443 = shalt.err (!%p1440_p6)
}
  0x24   : > { %s1612_s13 = smov 128   ;;  %s1613_s14 = smov 8  }
  0x25   : > { %1266 = dma.hbm_to_vmem [thread:$0]  (!%p1688_p5), %s1877_s2, 2048, %s248_s25, [#allocation13], %s1612_s13, %s1612_s13, %s1613_s14  }
  0x26   : > { %p1889_p7 = scmp.ne.s32.totalorder %s1887_s28, 0  ;;  %s1444_s29 = scalar_lea.hbm %s1875_s0, 16 }
  0x27   : > { %p1445_p2 = scmp.ne.s32.totalorder %s1875_s0, %s1444_s29  ;;  %p1451_p9 = scmp.lt.u32.totalorder %s1444_s29, %s1875_s0 }
  0x28   : > { %s1896_s27 = smov (%p1889_p7, %s35_s27), 0 }
  0x29   : > { %p1447_p3 = pnand %p1445_p2, %p1705_p8 }
  0x2b   : > { %p1448_p6 = pneg %p1447_p3 }
  0x2d   : > { %p1453_p10 = pnand %p1451_p9, %p1448_p6 }
  0x2f   : > { %1456 = shalt.err (!%p1453_p10)
}
  0x30   : > { %s1614_s25 = smov [#allocation7]   ;;  %s1615_s11 = smov [#allocation11]  }
  0x31   : > { %1260 = dma.hbm_to_smem (!%p1688_p5), %s1875_s0, 16, %s1614_s25, [#allocation10]  }
  0x32   : > { %s229_s12 = sshll.u32 %s1615_s11, 4  ;;  %s1616_s15 = smov [#allocation14]   ;;  %s230_s12 = int_to_ptr.vmem [resolvable:$true] %s229_s12 }
  0x33   : > { %s265_s16 = sshll.u32 %s1616_s15, 4  ;;  %s1457_s30 = scalar_lea.hbm %s1876_s1, 256  ;;  %s266_s16 = int_to_ptr.vmem [resolvable:$true] %s265_s16 }
  0x34   : > { %p1458_p11 = scmp.ne.s32.totalorder %s1876_s1, %s1457_s30  ;;  %p1464_p0 = scmp.lt.u32.totalorder %s1457_s30, %s1876_s1 }
  0x36   : > { %p1460_p12 = pnand %p1458_p11, %p1705_p8 }
  0x38   : > { %p1461_p13 = pneg %p1460_p12 }
  0x3a   : > { %p1466_p1 = pnand %p1464_p0, %p1461_p13 }
  0x3c   : > { %1469 = shalt.err (!%p1466_p1)
}
  0x3d   : > { %s1470_s25 = scalar_lea.vmem %s230_s12, 256  ;;  %p1478_p3 = scmp.lt.s32.totalorder %s230_s12, %s230_s12 }
  0x3e   : > { %p1471_p4 = scmp.ne.s32.totalorder %s230_s12, %s1470_s25  ;;  %p1479_p6 = scmp.lt.s32.totalorder %s1470_s25, %s1470_s25 }
  0x40   : > { %p1473_p7 = pnand %p1471_p4, %p1705_p8  ;;  %p1480_p9 = por %p1479_p6, %p1478_p3 }
  0x42   : > { %p1474_p2 = pneg %p1473_p7 }
  0x44   : > { %p1481_p10 = pnand %p1480_p9, %p1474_p2 }
  0x46   : > { %1484 = shalt.err (!%p1481_p10)
}
  0x47   : > { %1263 = dma.hbm_to_vmem [thread:$0]  (!%p1688_p5), %s1876_s1, 256, %s230_s12, [#allocation8], %s1612_s13, %s1612_s13, %s1613_s14  }
  0x48   : > { %s1485_s17 = scalar_lea.hbm %s1878_s3, 2048 }
  0x49   : > { %p1486_p11 = scmp.ne.s32.totalorder %s1878_s3, %s1485_s17  ;;  %p1492_p0 = scmp.lt.u32.totalorder %s1485_s17, %s1878_s3 }
  0x4b   : > { %p1488_p12 = pnand %p1486_p11, %p1705_p8 }
  0x4d   : > { %p1489_p13 = pneg %p1488_p12 }
  0x4f   : > { %p1494_p1 = pnand %p1492_p0, %p1489_p13 }
  0x51   : > { %1497 = shalt.err (!%p1494_p1)
}
  0x52   : > { %s1498_s7 = scalar_lea.vmem %s266_s16, 2048  ;;  %p1506_p3 = scmp.lt.s32.totalorder %s266_s16, %s266_s16 }
  0x53   : > { %p1499_p4 = scmp.ne.s32.totalorder %s266_s16, %s1498_s7  ;;  %p1507_p6 = scmp.lt.s32.totalorder %s1498_s7, %s1498_s7 }
  0x55   : > { %p1501_p7 = pnand %p1499_p4, %p1705_p8  ;;  %p1508_p9 = por %p1507_p6, %p1506_p3 }
  0x57   : > { %p1502_p2 = pneg %p1501_p7 }
  0x59   : > { %p1509_p10 = pnand %p1508_p9, %p1502_p2 }
  0x5b   : > { %1512 = shalt.err (!%p1509_p10)
}
  0x5c   : > { %1269 = dma.hbm_to_vmem [thread:$0]  (!%p1688_p5), %s1878_s3, 2048, %s266_s16, [#allocation13], %s1612_s13, %s1612_s13, %s1613_s14  }
  0x5d   : > { %s1617_s25 = smov [#allocation15]   ;;  %s1513_s15 = scalar_lea.hbm %s1879_s4, 2048 }
  0x5e   : > { %s282_s28 = sshll.u32 %s1617_s25, 4  ;;  %p1514_p11 = scmp.ne.s32.totalorder %s1879_s4, %s1513_s15  ;;  %s283_s28 = int_to_ptr.vmem [resolvable:$true] %s282_s28 }
  0x5f   : > { %p1520_p0 = scmp.lt.u32.totalorder %s1513_s15, %s1879_s4 }
  0x60   : > { %p1516_p12 = pnand %p1514_p11, %p1705_p8 }
  0x62   : > { %p1517_p13 = pneg %p1516_p12 }
  0x64   : > { %p1522_p1 = pnand %p1520_p0, %p1517_p13 }
  0x66   : > { %1525 = shalt.err (!%p1522_p1)
}
  0x67   : > { %s1526_s13 = scalar_lea.vmem %s283_s28, 2048  ;;  %p1534_p3 = scmp.lt.s32.totalorder %s283_s28, %s283_s28 }
  0x68   : > { %p1527_p4 = scmp.ne.s32.totalorder %s283_s28, %s1526_s13  ;;  %p1535_p6 = scmp.lt.s32.totalorder %s1526_s13, %s1526_s13 }
  0x6a   : > { %p1529_p7 = pnand %p1527_p4, %p1705_p8  ;;  %p1536_p9 = por %p1535_p6, %p1534_p3 }
  0x6c   : > { %p1530_p2 = pneg %p1529_p7 }
  0x6e   : > { %p1537_p10 = pnand %p1536_p9, %p1530_p2 }
  0x70   : > { %1540 = shalt.err (!%p1537_p10)
}
  0x71   : > { %s1618_s14 = smov 64   ;;  %s1619_s16 = smov 4  }
  0x72   : > { %1272 = dma.hbm_to_vmem [thread:$0]  (!%p1688_p5), %s1879_s4, 2048, %s283_s28, [#allocation16], %s1618_s14, %s1618_s14, %s1619_s16  }
  0x73   : > { %p1890_p11 = scmp.ne.s32.totalorder %s1885_s23, 0 }
  0x74   : > { %p1891_p12 = scmp.ne.s32.totalorder (!%p1890_p11), %s1884_s22, 0 }
  0x75   : > { %298 = sbr.rel (%p1890_p11) target bundleno = 1150 (0x47e), region = 40 }
  0x7c   : > { %1580 = dma.done.wait (%p1891_p12), [#allocation10], 16  }
  0x7d   : > { %1582 = vsyncadd (%p1891_p12), [#allocation10], 4294967280 }
  0x7e   : > { %1584 = dma.done.wait (%p1891_p12), [#allocation8], 256  }
  0x7f   : > { %1586 = vsyncadd (%p1891_p12), [#allocation8], 4294967040 }
  0x80   : > { %1588 = dma.done.wait (%p1891_p12), [#allocation13], 4096  }
  0x81   : > { %1590 = vsyncadd (%p1891_p12), [#allocation13], 4294963200 }
  0x82   : > { %1592 = dma.done.wait (%p1891_p12), [#allocation16], 2048  }
  0x83   : > { %1594 = vsyncadd (%p1891_p12), [#allocation16], 4294965248 }
  0x84   : > { %320 = sfence }
  0x85   : > { %s1822_s23 = sld [smem:[#allocation7]]  ;;  %s1824_s26 = sld [smem:[#allocation7 + $0x1]] }
  0x86   : > { %s1826_s9 = sld [smem:[#allocation7 + $0x2]]  ;;  %p347_p5 = scmp.eq.s32.totalorder %s1601_s18, 0 }
  0x87   : > { %v353_v0 = vld [vmem:[#allocation11] sm:$0xff] (%p347_p5)  ;;  %v354_v1 = vld [vmem:[#allocation11 + $0x8] sm:$0xff] (%p347_p5)  ;;  %vm379_vm0 = vcmask (%p347_p5), 7168   ;;  %v1620_v3 = vmov (%p347_p5), 0.0  }
  0x88   : > { %352 = sbr.rel (!%p347_p5) target bundleno = 310 (0x136), region = 64  ;;  %v355_v2 = vand.u32 (%p347_p5), 2147483647, %v353_v0  ;;  %382 = vst.msk [vmem:[#allocation5] sm:$0xff] (%p347_p5), %vm379_vm0, %v1620_v3  ;;  %383 = vst.msk [vmem:[#allocation5 + $0x8] sm:$0xff] (%p347_p5), %vm379_vm0, %v1620_v3 }
  0x89   : > { %v356_v4 = vand.u32 (%p347_p5), 2147483647, %v354_v1 }
  0x8a   : > { %357 = vmax.xlane.f32.xlu0 (%p347_p5), %v355_v2 }
  0x8e   : > { %359 = vmax.xlane.f32.xlu0 (%p347_p5), %v356_v4 }
 0x117   : > { %v358_v5 = vpop.xlane.xlu0 %357 }
 0x118   : > { %v361_v6 = vmax.f32 %v358_v5, 1e-05 }
 0x11a   : > { %1324 = vrcp.f32 %v361_v6  ;;  %v377_v7 = vmul.f32 0.007874016, %v361_v6 }
 0x11b   : > { %v360_v8 = vpop.xlane.xlu0 %359 }
 0x11c   : > { %380 = vst.msk [vmem:[#allocation3] sm:$0xff] %vm379_vm0, %v377_v7  ;;  %v362_v9 = vmax.f32 %v360_v8, 1e-05 }
 0x11e   : > { %1326 = vrcp.f32 %v362_v9  ;;  %v378_v10 = vmul.f32 0.007874016, %v362_v9 }
 0x120   : > { %381 = vst.msk [vmem:[#allocation3 + $0x8] sm:$0xff] %vm379_vm0, %v378_v10 }
 0x124   : > { %v1325_v11 = vpop.eup %1324 }
 0x125   : > { %v365_v12 = vmul.f32 127.0, %v1325_v11 }
 0x127   : > { %v367_v13 = vmul.f32 %v365_v12, %v353_v0 }
 0x128   : > { %v1327_v14 = vpop.eup %1326 }
 0x129   : > { %v1227_v15 = vround.rtne.f32 %v367_v13  ;;  %v366_v16 = vmul.f32 127.0, %v1327_v14 }
 0x12b   : > { %v368_v17 = vmul.f32 %v366_v16, %v354_v1  ;;  %v371_v18 = vmax.f32 %v1227_v15, -128.0 }
 0x12d   : > { %v1228_v19 = vround.rtne.f32 %v368_v17  ;;  %v373_v21 = vmin.f32 %v371_v18, 127.0 }
 0x12f   : > { %v372_v20 = vmax.f32 %v1228_v19, -128.0 }
 0x131   : > { %v374_v22 = vmin.f32 %v372_v20, 127.0 }
 0x133   : > { %v375_v23 = vpack.c.bf16 %v374_v22, %v373_v21 }
 0x135   : > { %376 = vst [vmem:[#allocation2] sm:$0xff] %v375_v23 }
 0x136 PF: > { %p1146_p8 = scmp.ne.s32.totalorder %s1601_s18, 0 }
 0x137   : > { %v1330_v24 = vld [vmem:[#allocation12 + $0x4] ss:$8 sps:$4 sm:$0xff] (!%p1146_p8)   ;;  %v1332_v25 = vld [vmem:[#allocation12] ss:$8 sps:$4 sm:$0xff] (!%p1146_p8)   ;;  %v1621_v26 = vmov (!%p1146_p8), 0   ;;  %v668_v45 = vstv (!%p1146_p8), %s1822_s23  ;;  %v713_v46 = vstv (!%p1146_p8), %s1824_s26  ;;  %v666_v49 = vld [vmem:[#allocation3] sm:$0xff] (!%p1146_p8) }
 0x138   : > { %386 = sbr.rel (%p1146_p8) target bundleno = 741 (0x2e5), region = 68  ;;  %516 = vmatprep.mubr.bf16.mxu0 (!%p1146_p8), %v1621_v26  ;;  %655 = vmatprep.mubr.bf16.mxu1 (!%p1146_p8), %v1621_v26  ;;  %v1333_v27 = vld [vmem:[#allocation12 + $0x14] ss:$8 sps:$4 sm:$0xff] (!%p1146_p8)   ;;  %v1335_v28 = vld [vmem:[#allocation12 + $0x10] ss:$8 sps:$4 sm:$0xff] (!%p1146_p8)   ;;  %v669_v51 = vmul.f32 (!%p1146_p8), %v668_v45, %v666_v49  ;;  %v714_v52 = vmul.f32 (!%p1146_p8), %v713_v46, %v666_v49  ;;  %vm757_vm1 = vcmask (!%p1146_p8), 7168  }
 0x139   : > { %484 = vmatprep.subr.bf16.mxu0 (!%p1146_p8), %v1330_v24  ;;  %1328 = vset.pattern.permute.xlu0 (!%p1146_p8), %v1621_v26  ;;  %v1336_v29 = vld [vmem:[#allocation12 + $0x24] ss:$8 sps:$4 sm:$0xff] (!%p1146_p8)   ;;  %v1338_v30 = vld [vmem:[#allocation12 + $0x20] ss:$8 sps:$4 sm:$0xff] (!%p1146_p8)   ;;  %v1339_v31 = vld [vmem:[#allocation12 + $0x34] ss:$8 sps:$4 sm:$0xff] (!%p1146_p8)  }
 0x13a   : > { %485 = vmatpush1.bf16.msra.mxu0 (!%p1146_p8), %v1332_v25  ;;  %1329 = vset.pattern.permute.xlu1 (!%p1146_p8), %v1621_v26  ;;  %v1350_v32 = vld [vmem:[#allocation14 + $0x4] ss:$8 sps:$4 sm:$0xff] (!%p1146_p8)   ;;  %v1353_v33 = vld [vmem:[#allocation14] ss:$8 sps:$4 sm:$0xff] (!%p1146_p8)   ;;  %v1341_v34 = vld [vmem:[#allocation12 + $0x30] ss:$8 sps:$4 sm:$0xff] (!%p1146_p8)  }
 0x13b   : > { %486 = vmatprep.subr.bf16.mxu0 (!%p1146_p8), %v1333_v27  ;;  %623 = vmatprep.subr.bf16.mxu1 (!%p1146_p8), %v1350_v32  ;;  %v1342_v35 = vld [vmem:[#allocation12 + $0x44] ss:$8 sps:$4 sm:$0xff] (!%p1146_p8)   ;;  %v1356_v36 = vld [vmem:[#allocation14 + $0x14] ss:$8 sps:$4 sm:$0xff] (!%p1146_p8)   ;;  %v1359_v37 = vld [vmem:[#allocation14 + $0x10] ss:$8 sps:$4 sm:$0xff] (!%p1146_p8)  }
 0x13c   : > { %624 = vmatpush1.bf16.msra.mxu1 (!%p1146_p8), %v1353_v33  ;;  %v1344_v38 = vld [vmem:[#allocation12 + $0x40] ss:$8 sps:$4 sm:$0xff] (!%p1146_p8)   ;;  %v1360_v39 = vld [vmem:[#allocation14 + $0x24] ss:$8 sps:$4 sm:$0xff] (!%p1146_p8)   ;;  %v1345_v40 = vld [vmem:[#allocation12 + $0x54] ss:$8 sps:$4 sm:$0xff] (!%p1146_p8)   ;;  %673 = vperm.xlu0 (!%p1146_p8), %1328, %v669_v51  }
 0x13d   : > { %625 = vmatprep.subr.bf16.mxu1 (!%p1146_p8), %v1356_v36  ;;  %v1362_v41 = vld [vmem:[#allocation14 + $0x20] ss:$8 sps:$4 sm:$0xff] (!%p1146_p8)   ;;  %v1363_v42 = vld [vmem:[#allocation14 + $0x34] ss:$8 sps:$4 sm:$0xff] (!%p1146_p8)   ;;  %v1347_v43 = vld [vmem:[#allocation12 + $0x50] ss:$8 sps:$4 sm:$0xff] (!%p1146_p8)   ;;  %718 = vperm.xlu1 (!%p1146_p8), %1329, %v714_v52  }
 0x13e   : > { %487 = vmatpush1.bf16.msra.mxu0 (!%p1146_p8), %v1335_v28  ;;  %v1348_v44 = vld [vmem:[#allocation12 + $0x64] ss:$8 sps:$4 sm:$0xff] (!%p1146_p8)   ;;  %v1365_v47 = vld [vmem:[#allocation14 + $0x30] ss:$8 sps:$4 sm:$0xff] (!%p1146_p8)   ;;  %v1352_v53 = vld [vmem:[#allocation12 + $0x60] ss:$8 sps:$4 sm:$0xff] (!%p1146_p8)  }
 0x13f   : > { %488 = vmatprep.subr.bf16.mxu0 %v1336_v29  ;;  %v1366_v48 = vld [vmem:[#allocation14 + $0x44] ss:$8 sps:$4 sm:$0xff]   ;;  %v667_v50 = vld [vmem:[#allocation3 + $0x8] sm:$0xff]  ;;  %v1368_v55 = vld [vmem:[#allocation14 + $0x40] ss:$8 sps:$4 sm:$0xff]  }
 0x140   : > { %626 = vmatpush1.bf16.msra.mxu1 %v1359_v37  ;;  %v1354_v54 = vld [vmem:[#allocation12 + $0x74] ss:$8 sps:$4 sm:$0xff]   ;;  %v670_v57 = vmul.f32 %v668_v45, %v667_v50  ;;  %v715_v58 = vmul.f32 %v713_v46, %v667_v50  ;;  %v1358_v59 = vld [vmem:[#allocation12 + $0x70] ss:$8 sps:$4 sm:$0xff]   ;;  %v1372_v61 = vld [vmem:[#allocation14 + $0x64] ss:$8 sps:$4 sm:$0xff]  }
 0x141   : > { %627 = vmatprep.subr.bf16.mxu1 %v1360_v39  ;;  %v1369_v56 = vld [vmem:[#allocation14 + $0x54] ss:$8 sps:$4 sm:$0xff]   ;;  %v1371_v60 = vld [vmem:[#allocation14 + $0x50] ss:$8 sps:$4 sm:$0xff]   ;;  %v387_v62 = vld [vmem:[#allocation2] sm:$0xff] }
 0x142   : > { %489 = vmatpush1.bf16.msra.mxu0 %v1338_v30  ;;  %678 = vperm.xlu0 %1328, %v670_v57   ;;  %v1374_v63 = vld [vmem:[#allocation14 + $0x60] ss:$8 sps:$4 sm:$0xff]   ;;  %v1375_v0 = vld [vmem:[#allocation14 + $0x74] ss:$8 sps:$4 sm:$0xff]   ;;  %v1377_v1 = vld [vmem:[#allocation14 + $0x70] ss:$8 sps:$4 sm:$0xff]  }
 0x143   : > { %490 = vmatprep.subr.bf16.mxu0 %v1339_v31  ;;  %723 = vperm.xlu1 %1329, %v715_v58   ;;  %v743_v52 = vld [vmem:[#allocation5] sm:$0xff] }
 0x144   : > { %628 = vmatpush1.bf16.msra.mxu1 %v1362_v41 }
 0x145   : > { %629 = vmatprep.subr.bf16.mxu1 %v1363_v42 }
 0x146   : > { %491 = vmatpush1.bf16.msra.mxu0 %v1341_v34 }
 0x147   : > { %492 = vmatprep.subr.bf16.mxu0 %v1342_v35 }
 0x148   : > { %630 = vmatpush1.bf16.msra.mxu1 %v1365_v47 }
 0x149   : > { %631 = vmatprep.subr.bf16.mxu1 %v1366_v48 }
 0x14a   : > { %493 = vmatpush1.bf16.msra.mxu0 %v1344_v38 }
 0x14b   : > { %494 = vmatprep.subr.bf16.mxu0 %v1345_v40 }
 0x14c   : > { %632 = vmatpush1.bf16.msra.mxu1 %v1368_v55 }
 0x14d   : > { %633 = vmatprep.subr.bf16.mxu1 %v1369_v56 }
 0x14e   : > { %495 = vmatpush1.bf16.msra.mxu0 %v1347_v43 }
 0x14f   : > { %496 = vmatprep.subr.bf16.mxu0 %v1348_v44 }
 0x150   : > { %634 = vmatpush1.bf16.msra.mxu1 %v1371_v60 }
 0x151   : > { %635 = vmatprep.subr.bf16.mxu1 %v1372_v61 }
 0x152   : > { %497 = vmatpush1.bf16.msra.mxu0 %v1352_v53 }
 0x153   : > { %498 = vmatprep.subr.bf16.mxu0 %v1354_v54  ;;  %v744_v54 = vld [vmem:[#allocation5 + $0x8] sm:$0xff] }
 0x154   : > { %636 = vmatpush1.bf16.msra.mxu1 %v1374_v63 }
 0x155   : > { %637 = vmatprep.subr.bf16.mxu1 %v1375_v0 }
 0x156   : > { %499 = vmatpush1.bf16.msra.mxu0 %v1358_v59 }
 0x158   : > { %638 = vmatpush1.bf16.msra.mxu1 %v1377_v1 }
 0x159   : > { %517 = vmatmul.mubr.bf16.vlgmr.msra.gmra.mrb[0].mxu0 %v387_v62 }
 0x15b   : > { %656 = vmatmul.mubr.bf16.vlgmr.msra.gmra.mrb[0].mxu1 %v387_v62 }
 0x1bb   : > { %v674_v2 = vpop.permute.xlu0 %673 }
 0x1bc   : > { %v719_v28 = vpop.permute.xlu1 %718 }
 0x1c1   : > { %v679_v6 = vpop.permute.xlu0 %678 }
 0x1c2   : > { %v724_v31 = vpop.permute.xlu1 %723 }
 0x22c   : > { %v518_v3 = vpop.f32.mrb[0].mxu0 }
 0x22d   : > { %v681_v4 = vmul.f32 %v674_v2, %v518_v3  ;;  %v520_v5 = vpop.f32.mrb[1].mxu0 }
 0x22e   : > { %v682_v7 = vmul.f32 %v674_v2, %v520_v5  ;;  %v522_v8 = vpop.f32.mrb[2].mxu0  ;;  %v657_v16 = vpop.f32.mrb[0].mxu1 }
 0x22f   : > { %v1179_v9 = vmul.f32 -1.442695, %v681_v4  ;;  %v683_v10 = vmul.f32 %v679_v6, %v522_v8  ;;  %v524_v11 = vpop.f32.mrb[3].mxu0  ;;  %v659_v17 = vpop.f32.mrb[1].mxu1  ;;  %v726_v29 = vmul.f32 %v719_v28, %v657_v16 }
 0x230   : > { %v1180_v12 = vmul.f32 -1.442695, %v682_v7  ;;  %v684_v13 = vmul.f32 %v679_v6, %v524_v11  ;;  %v661_v18 = vpop.f32.mrb[2].mxu1  ;;  %v727_v36 = vmul.f32 %v719_v28, %v659_v17 }
 0x231   : > { %1378 = vpow2.f32 %v1179_v9  ;;  %v1181_v14 = vmul.f32 -1.442695, %v683_v10  ;;  %v663_v19 = vpop.f32.mrb[3].mxu1  ;;  %v728_v40 = vmul.f32 %v724_v31, %v661_v18 }
 0x232   : > { %1380 = vpow2.f32 %v1180_v12  ;;  %v1182_v15 = vmul.f32 -1.442695, %v684_v13  ;;  %v729_v43 = vmul.f32 %v724_v31, %v663_v19 }
 0x233   : > { %1382 = vpow2.f32 %v1181_v14 }
 0x234   : > { %1384 = vpow2.f32 %v1182_v15 }
 0x23b   : > { %v1379_v20 = vpop.eup %1378 }
 0x23c   : > { %v1381_v21 = vpop.eup %1380  ;;  %v697_v22 = vadd.f32 1.0, %v1379_v20 }
 0x23d   : > { %v1383_v23 = vpop.eup %1382  ;;  %v698_v24 = vadd.f32 1.0, %v1381_v21 }
 0x23e   : > { %v1385_v25 = vpop.eup %1384  ;;  %1386 = vrcp.f32 %v697_v22  ;;  %v699_v26 = vadd.f32 1.0, %v1383_v23 }
 0x23f   : > { %1388 = vrcp.f32 %v698_v24  ;;  %v700_v27 = vadd.f32 1.0, %v1385_v25 }
 0x240   : > { %1390 = vrcp.f32 %v699_v26 }
 0x241   : > { %1392 = vrcp.f32 %v700_v27 }
 0x248   : > { %v1387_v30 = vpop.eup %1386 }
 0x249   : > { %v1389_v32 = vpop.eup %1388  ;;  %v709_v33 = vmul.f32 %v1387_v30, %v681_v4 }
 0x24a   : > { %v1391_v34 = vpop.eup %1390  ;;  %v710_v35 = vmul.f32 %v1389_v32, %v682_v7 }
 0x24b   : > { %v1393_v37 = vpop.eup %1392  ;;  %v711_v38 = vmul.f32 %v1391_v34, %v683_v10  ;;  %v730_v39 = vmul.f32 %v726_v29, %v709_v33 }
 0x24c   : > { %v712_v41 = vmul.f32 %v1393_v37, %v684_v13  ;;  %v731_v42 = vmul.f32 %v727_v36, %v710_v35 }
 0x24d   : > { %739 = vst [vmem:[#allocation4] sm:$0xff] %v730_v39  ;;  %v732_v44 = vmul.f32 %v728_v40, %v711_v38  ;;  %v745_v45 = vand.u32 2147483647, %v730_v39 }
 0x24e   : > { %740 = vst [vmem:[#allocation4 + $0x8] sm:$0xff] %v731_v42  ;;  %v733_v46 = vmul.f32 %v729_v43, %v712_v41  ;;  %v746_v47 = vand.u32 2147483647, %v731_v42 }
 0x24f   : > { %741 = vst [vmem:[#allocation4 + $0x10] sm:$0xff] %v732_v44  ;;  %v747_v48 = vand.u32 2147483647, %v732_v44 }
 0x250   : > { %742 = vst [vmem:[#allocation4 + $0x18] sm:$0xff] %v733_v46  ;;  %v749_v49 = vmax.f32.f32 %v745_v45, %v746_v47  ;;  %v748_v50 = vand.u32 2147483647, %v733_v46 }
 0x252   : > { %750 = vmax.xlane.f32.xlu0 %v749_v49  ;;  %v752_v51 = vmax.f32.f32 %v747_v48, %v748_v50 }
 0x254   : > { %753 = vmax.xlane.f32.xlu1 %v752_v51 }
 0x2df   : > { %v751_v53 = vpop.xlane.xlu0 %750 }
 0x2e0   : > { %v755_v55 = vmax.f32 %v743_v52, %v751_v53 }
 0x2e1   : > { %v754_v56 = vpop.xlane.xlu1 %753 }
 0x2e2   : > { %758 = vst.msk [vmem:[#allocation5] sm:$0xff] %vm757_vm1, %v755_v55  ;;  %v756_v57 = vmax.f32 %v744_v54, %v754_v56 }
 0x2e4   : > { %759 = vst.msk [vmem:[#allocation5 + $0x8] sm:$0xff] %vm757_vm1, %v756_v57 }
 0x2e5 PF: > { %p1183_p13 = scmp.ne.s32.totalorder %s1601_s18, 1 }
 0x2e6   : > { %v1622_v60 = vmov (!%p1183_p13), 0   ;;  %v1396_v63 = vld [vmem:[#allocation15 + $0x40] sm:$0xff] (!%p1183_p13)   ;;  %v1398_v1 = vld [vmem:[#allocation15 + $0x48] sm:$0xff] (!%p1183_p13)   ;;  %v1400_v3 = vld [vmem:[#allocation15 + $0x50] sm:$0xff] (!%p1183_p13)   ;;  %s992_s18 = smul.f32 (!%p1183_p13), 0.007874016, %s1826_s9 }
 0x2e7   : > { %763 = sbr.rel (%p1183_p13) target bundleno = 1124 (0x464), region = 72  ;;  %1394 = vset.pattern.permute.xlu0 (!%p1183_p13), %v1622_v60  ;;  %1395 = vset.pattern.permute.xlu1 (!%p1183_p13), %v1622_v60  ;;  %v1397_v0 = vld [vmem:[#allocation15] sm:$0xff] (!%p1183_p13)   ;;  %v1399_v2 = vld [vmem:[#allocation15 + $0x8] sm:$0xff] (!%p1183_p13)   ;;  %v1401_v4 = vld [vmem:[#allocation15 + $0x10] sm:$0xff] (!%p1183_p13)  }
 0x2e8   : > { %1205 = vmatprep.subr.bf16.mxu0 (!%p1183_p13), %v1396_v63  ;;  %v1402_v5 = vld [vmem:[#allocation15 + $0x58] sm:$0xff] (!%p1183_p13)   ;;  %v1404_v10 = vld [vmem:[#allocation15 + $0x60] sm:$0xff] (!%p1183_p13)   ;;  %v1406_v13 = vld [vmem:[#allocation15 + $0x68] sm:$0xff] (!%p1183_p13)   ;;  %v993_v19 = vstv (!%p1183_p13), %s992_s18 }
 0x2e9   : > { %v778_v58 = vld [vmem:[#allocation5] sm:$0xff] (!%p1183_p13)  ;;  %1206 = vmatpush3.bf16.msra.mxu0 (!%p1183_p13), %v1397_v0  ;;  %v1403_v6 = vld [vmem:[#allocation15 + $0x18] sm:$0xff] (!%p1183_p13)   ;;  %v1407_v14 = vld [vmem:[#allocation15 + $0x28] sm:$0xff] (!%p1183_p13)  }
 0x2ea   : > { %v780_v61 = vmax.f32 (!%p1183_p13), %v778_v58, 1e-05  ;;  %1207 = vmatprep.subr.bf16.mxu0 (!%p1183_p13), %v1398_v1  ;;  %v1405_v12 = vld [vmem:[#allocation15 + $0x20] sm:$0xff] (!%p1183_p13)   ;;  %v1408_v15 = vld [vmem:[#allocation15 + $0x70] sm:$0xff] (!%p1183_p13)   ;;  %v1410_v17 = vld [vmem:[#allocation15 + $0x78] sm:$0xff] (!%p1183_p13)  }
 0x2eb   : > { %v779_v59 = vld [vmem:[#allocation5 + $0x8] sm:$0xff] (!%p1183_p13)  ;;  %v1409_v16 = vld [vmem:[#allocation15 + $0x30] sm:$0xff] (!%p1183_p13)   ;;  %v1411_v18 = vld [vmem:[#allocation15 + $0x38] sm:$0xff] (!%p1183_p13)  }
 0x2ec   : > { %v781_v62 = vmax.f32 (!%p1183_p13), %v779_v59, 1e-05  ;;  %1412 = vrcp.f32 (!%p1183_p13), %v780_v61  ;;  %v994_v20 = vmul.f32 (!%p1183_p13), %v993_v19, %v780_v61  ;;  %v774_v22 = vld [vmem:[#allocation4] sm:$0xff] (!%p1183_p13)  ;;  %v775_v23 = vld [vmem:[#allocation4 + $0x8] sm:$0xff] (!%p1183_p13)  ;;  %v776_v27 = vld [vmem:[#allocation4 + $0x10] sm:$0xff] (!%p1183_p13) }
 0x2ed   : > { %1208 = vmatpush3.bf16.msra.mxu0 (!%p1183_p13), %v1399_v2  ;;  %v777_v28 = vld [vmem:[#allocation4 + $0x18] sm:$0xff] (!%p1183_p13) }
 0x2ee   : > { %1414 = vrcp.f32 %v781_v62  ;;  %1209 = vmatprep.subr.bf16.mxu0 %v1400_v3  ;;  %v995_v21 = vmul.f32 %v993_v19, %v781_v62  ;;  %1000 = vperm.xlu1 %1395, %v994_v20  }
 0x2f1   : > { %1210 = vmatpush3.bf16.msra.mxu0 %v1401_v4 }
 0x2f2   : > { %1211 = vmatprep.subr.bf16.mxu0 %v1402_v5  ;;  %1005 = vperm.xlu1 %1395, %v995_v21  }
 0x2f5   : > { %1212 = vmatpush3.bf16.msra.mxu0 %v1403_v6 }
 0x2f6   : > { %v1413_v7 = vpop.eup %1412  ;;  %1213 = vmatprep.subr.bf16.mxu0 %v1404_v10 }
 0x2f7   : > { %v784_v9 = vmul.f32 127.0, %v1413_v7 }
 0x2f8   : > { %v1415_v8 = vpop.eup %1414 }
 0x2f9   : > { %788 = vperm.xlu0 %1394, %v784_v9   ;;  %v785_v11 = vmul.f32 127.0, %v1415_v8  ;;  %1214 = vmatpush3.bf16.msra.mxu0 %v1405_v12 }
 0x2fa   : > { %1215 = vmatprep.subr.bf16.mxu0 %v1406_v13 }
 0x2fd   : > { %793 = vperm.xlu0 %1394, %v785_v11   ;;  %1216 = vmatpush3.bf16.msra.mxu0 %v1407_v14 }
 0x2fe   : > { %1217 = vmatprep.subr.bf16.mxu0 %v1408_v15 }
 0x301   : > { %1218 = vmatpush3.bf16.msra.mxu0 %v1409_v16 }
 0x302   : > { %1219 = vmatprep.subr.bf16.mxu0 %v1410_v17 }
 0x305   : > { %1220 = vmatpush3.bf16.msra.mxu0 %v1411_v18 }
 0x36d   : > { %v1001_v46 = vpop.permute.xlu1 %1000 }
 0x371   : > { %v1006_v54 = vpop.permute.xlu1 %1005 }
 0x378   : > { %v789_v24 = vpop.permute.xlu0 %788 }
 0x379   : > { %v796_v25 = vmul.f32 %v789_v24, %v774_v22  ;;  %v797_v26 = vmul.f32 %v789_v24, %v775_v23 }
 0x37b   : > { %v1229_v29 = vround.rtne.f32 %v796_v25  ;;  %v1230_v30 = vround.rtne.f32 %v797_v26 }
 0x37c   : > { %v794_v31 = vpop.permute.xlu0 %793 }
 0x37d   : > { %v798_v32 = vmul.f32 %v794_v31, %v776_v27  ;;  %v799_v33 = vmul.f32 %v794_v31, %v777_v28  ;;  %v804_v34 = vmax.f32 %v1229_v29, -128.0  ;;  %v805_v37 = vmax.f32 %v1230_v30, -128.0 }
 0x37f   : > { %v1231_v35 = vround.rtne.f32 %v798_v32  ;;  %v1232_v36 = vround.rtne.f32 %v799_v33  ;;  %v808_v40 = vmin.f32 %v804_v34, 127.0  ;;  %v809_v42 = vmin.f32 %v805_v37, 127.0 }
 0x381   : > { %v806_v38 = vmax.f32 %v1231_v35, -128.0  ;;  %v807_v39 = vmax.f32 %v1232_v36, -128.0 }
 0x383   : > { %v810_v41 = vmin.f32 %v806_v38, 127.0  ;;  %v811_v43 = vmin.f32 %v807_v39, 127.0 }
 0x385   : > { %v813_v44 = vpack.c.bf16 %v811_v43, %v809_v42  ;;  %v812_v45 = vpack.c.bf16 %v810_v41, %v808_v40 }
 0x387   : > { %976 = vmatprep.mubr.bf16.mxu0 %v813_v44 }
 0x388   : > { %977 = vmatmul.mubr.bf16.vlgmr.msra.gmra.mrb[0].mxu0 %v812_v45 }
 0x45b   : > { %v1221_v47 = vpop.f32.mrb[0].mxu0 }
 0x45c   : > { %v1222_v48 = vpop.f32.mrb[1].mxu0 }
 0x45d   : > { %v1223_v49 = vadd.f32 %v1222_v48, %v1221_v47  ;;  %v1224_v50 = vpop.f32.mrb[2].mxu0 }
 0x45e   : > { %v1225_v51 = vpop.f32.mrb[3].mxu0 }
 0x45f   : > { %v1008_v52 = vmul.f32 %v1223_v49, %v1001_v46  ;;  %v1226_v53 = vadd.f32 %v1225_v51, %v1224_v50 }
 0x461   : > { %1010 = vst [vmem:[#allocation17] sm:$0xff] %v1008_v52  ;;  %v1009_v55 = vmul.f32 %v1226_v53, %v1006_v54 }
 0x463   : > { %1011 = vst [vmem:[#allocation17 + $0x8] sm:$0xff] %v1009_v55 }
 0x464 PF: > { %p1840_p0 = scmp.eq.s32.totalorder %s1130_s21, 1  ;;  %s1623_s12 = smov [#allocation17]  }
 0x465   : > { %s1021_s8 = sshll.u32 %s1623_s12, 4  ;;  %s1022_s8 = int_to_ptr.vmem [resolvable:$true] %s1021_s8 }
 0x466   : > { %s1541_s25 = scalar_lea.vmem %s1022_s8, 256  ;;  %p1548_p2 = scmp.lt.s32.totalorder %s1022_s8, %s1022_s8 }
 0x467   : > { %p1542_p1 = scmp.ne.s32.totalorder %s1022_s8, %s1541_s25  ;;  %p1549_p3 = scmp.lt.s32.totalorder %s1541_s25, %s1541_s25 }
 0x469   : > { %p1543_p4 = pnand %p1542_p1, %p1840_p0  ;;  %p1550_p6 = por %p1549_p3, %p1548_p2 }
 0x46b   : > { %p1544_p7 = pneg %p1543_p4 }
 0x46d   : > { %p1551_p9 = pnand %p1550_p6, %p1544_p7 }
 0x46f   : > { %1554 = shalt.err (!%p1551_p9)
}
 0x470   : > { %s1555_s21 = scalar_lea.hbm %s1880_s5, 256 }
 0x471   : > { %p1556_p10 = scmp.ne.s32.totalorder %s1880_s5, %s1555_s21  ;;  %p1561_p5 = scmp.lt.u32.totalorder %s1555_s21, %s1880_s5 }
 0x473   : > { %p1557_p11 = pnand %p1556_p10, %p1840_p0 }
 0x475   : > { %p1558_p12 = pneg %p1557_p11 }
 0x477   : > { %p1563_p8 = pnand %p1561_p5, %p1558_p12 }
 0x479   : > { %1566 = shalt.err (!%p1563_p8)
}
 0x47a   : > { %s1624_s30 = smov 128   ;;  %s1625_s29 = smov 8  }
 0x47b   : > { %1254 = dma.vmem_to_hbm [thread:$0]  (%p1840_p0), %s1022_s8, 256, %s1880_s5, [#allocation9], %s1624_s30, %s1624_s30, %s1625_s29  }
 0x47c   : > { %1596 = dma.done.wait (%p1840_p0), [#allocation9], 256  }
 0x47d   : > { %1598 = vsyncadd (%p1840_p0), [#allocation9], 4294967040 }
 0x47e PF: > { %s20_s20 = sadd.s32 1, %s1609_s20   ;;  %s1893_s18 = smov %s1605_s19 }
 0x47f   : > { %p17_p13 = scmp.ge.s32.totalorder %s20_s20, 4   ;;  %s1894_s19 = smov %s1896_s27 }
 0x481   :  { %19 = sbr.rel (!%p17_p13) target bundleno = 6 (0x6), region = 113 }
 0x488   :  { %1037 = vsyncpa [#allocation8], 1 }
 0x489   :  { %1039 = vsyncpa [#allocation8 + $0x1], 1 }
 0x48a   :  { %1040 = vsyncpa [#allocation13], 1 }
 0x48b   :  { %1041 = vsyncpa [#allocation16], 1 }
 0x48c   :  { %1042 = vsyncpa [#allocation9], 1 }
 0x48d   :  { %1044 = vsyncpa [#allocation9 + $0x1], 1 }
 0x48e   :  { %1045 = vsyncpa [#allocation10], 1 }
 0x48f   :  { %1047 = vsyncpa [#allocation10 + $0x1], 1 }

</bundles_post_ra>
